<compile_context>
chip_gen: v5e
topology: v5e:2x2
jax: 0.10.0
libtpu: 0.0.40
codegen_flags: <defaults>
</compile_context>

<pallas_src>
import jax
import jax.numpy as jnp
from jax.experimental import pallas as pl
from jax.experimental.pallas import tpu as pltpu

_MAX_ROW_TILE = 512                        # target rows per grid step
_VMEM_BUDGET_PER_BLOCK = 4 * 1024 * 1024   # bytes for one (TB, N) f32 block


def _row_tile(n_rows, n_symbols):
    """Rows per block: as large as possible (multiple of 8), VMEM-capped."""
    by_vmem = _VMEM_BUDGET_PER_BLOCK // (4 * max(n_symbols, 1))
    tb = min(_MAX_ROW_TILE, max(n_rows, 1), max(by_vmem, 8))
    return max(8, (tb // 8) * 8)


def _eps_greedy_train_kernel(t_ref, rnd_ref, truth_ref, chosen_ref):
    x = t_ref[...].astype(jnp.float32)                          # (TB, N)
    tb, n = x.shape
    lane = jax.lax.broadcasted_iota(jnp.int32, (tb, n), 1)

    # Row-wise max and first-argmax (greedy choice).
    m = jnp.max(x, axis=-1, keepdims=True)                      # (TB, 1)
    idx_max = jnp.min(jnp.where(x >= m, lane, n), axis=-1,
                      keepdims=True)                            # (TB, 1)

    # Epsilon-greedy override, precomputed per logical row (-1 => greedy).
    rnd = rnd_ref[...]                                          # (TB, 1) int32
    chosen = jnp.where(rnd >= 0, rnd, idx_max)                  # (TB, 1)

    # softmax value at the chosen symbol: gather exp(x - m) before normalizing
    # (single (TB,1) divide instead of an N-wide per-row divide).
    e = jnp.exp(x - m)                                          # (TB, N)
    denom = jnp.sum(e, axis=-1, keepdims=True)                  # (TB, 1)
    e_chosen = jnp.sum(jnp.where(lane == chosen, e, 0.0),
                       axis=-1, keepdims=True)                  # (TB, 1)

    truth_ref[...] = e_chosen / denom
    chosen_ref[...] = chosen


def _eps_greedy_eval_kernel(t_ref, vals_ref, idx_ref):
    x = t_ref[...].astype(jnp.float32)                          # (TB, N)
    tb, n = x.shape
    lane = jax.lax.broadcasted_iota(jnp.int32, (tb, n), 1)
    m = jnp.max(x, axis=-1, keepdims=True)                      # (TB, 1)
    idx = jnp.min(jnp.where(x >= m, lane, n), axis=-1, keepdims=True)
    vals_ref[...] = m.astype(vals_ref.dtype)
    idx_ref[...] = idx


def epsilon_greedy(t, epsilon, eval, seed=0):
    """Mirrors EpsilonGreedy.forward(t, epsilon, eval)."""
    lead = t.shape[:-1]
    n = t.shape[-1]
    t2 = t.reshape(-1, n)
    b = t2.shape[0]

    tb = _row_tile(b, n)
    bp = ((b + tb - 1) // tb) * tb
    if bp != b:
        t2 = jnp.pad(t2, ((0, bp - b), (0, 0)))
    grid = (bp // tb,)

    cparams = pltpu.CompilerParams(
        dimension_semantics=("parallel",),        # row blocks are independent
        vmem_limit_bytes=32 * 1024 * 1024)

    if eval:
        vals, idx = pl.pallas_call(
            _eps_greedy_eval_kernel,
            out_shape=(jax.ShapeDtypeStruct((bp, 1), t.dtype),
                       jax.ShapeDtypeStruct((bp, 1), jnp.int32)),
            grid=grid,
            in_specs=[pl.BlockSpec((tb, n), lambda i: (i, 0))],
            out_specs=(pl.BlockSpec((tb, 1), lambda i: (i, 0)),
                       pl.BlockSpec((tb, 1), lambda i: (i, 0))),
            compiler_params=cparams,
        )(t2)
        # torch.max(t, dim=-1, keepdim=True) -> (values, indices), keepdim=True
        return (vals[:b].reshape(lead + (1,)),
                idx[:b].reshape(lead + (1,)))

    # Host/XLA-side randomness (mirrors torch.rand / torch.randint in the
    # original module); the stream depends only on the logical row index,
    # i.e. it is independent of tile size and padding.
    key = jax.random.PRNGKey(seed)
    k_sel, k_idx = jax.random.split(key)
    sel = jax.random.uniform(k_sel, (b, 1)) < epsilon
    idx_rand = jax.random.randint(k_idx, (b, 1), 0, n, dtype=jnp.int32)
    rnd_override = jnp.where(sel, idx_rand, jnp.int32(-1))      # -1 => greedy
    if bp != b:
        rnd_override = jnp.pad(rnd_override, ((0, bp - b), (0, 0)),
                               constant_values=-1)

    truth, chosen = pl.pallas_call(
        _eps_greedy_train_kernel,
        out_shape=(jax.ShapeDtypeStruct((bp, 1), jnp.float32),
                   jax.ShapeDtypeStruct((bp, 1), jnp.int32)),
        grid=grid,
        in_specs=[pl.BlockSpec((tb, n), lambda i: (i, 0)),
                  pl.BlockSpec((tb, 1), lambda i: (i, 0))],
        out_specs=(pl.BlockSpec((tb, 1), lambda i: (i, 0)),
                   pl.BlockSpec((tb, 1), lambda i: (i, 0))),
        compiler_params=cparams,
    )(t2, rnd_override)

    truth = truth[:b].reshape(lead + (1,))      # (..., 1)  like unsqueeze(-1)
    chosen = chosen[:b].reshape(lead)           # (...)
    return truth, chosen


if __name__ == "__main__":
    key = jax.random.PRNGKey(0)
    # t: (batch=2, seq=8, n_symbols=16) logits, as the forward implies
    t = jax.random.normal(key, (2, 8, 16), dtype=jnp.float32)

    # --- eval path -----------------------------------------------------------
    vals, idx = jax.block_until_ready(epsilon_greedy(t, 0.1, True))
    ref_vals = jnp.max(t, axis=-1, keepdims=True)
    ref_idx = jnp.argmax(t, axis=-1, keepdims=True).astype(jnp.int32)
    assert vals.shape == (2, 8, 1) and idx.shape == (2, 8, 1)
    assert jnp.allclose(vals, ref_vals, atol=1e-6)
    assert jnp.array_equal(idx, ref_idx)

    # --- train (epsilon-greedy) path ----------------------------------------
    truth, chosen = jax.block_until_ready(
        epsilon_greedy(t, 0.25, False, seed=42))
    assert truth.shape == (2, 8, 1) and chosen.shape == (2, 8)
    assert chosen.dtype == jnp.int32
    assert bool(jnp.all((chosen >= 0) & (chosen < 16)))
    # truth_values must equal softmax(t) gathered at the chosen symbol
    sm = jax.nn.softmax(t, axis=-1)
    gathered = jnp.take_along_axis(sm, chosen[..., None], axis=-1)
    assert jnp.allclose(truth, gathered, atol=1e-5)

    # epsilon = 0 must reduce to pure greedy argmax
    _, chosen0 = jax.block_until_ready(epsilon_greedy(t, 0.0, False, seed=7))
    assert jnp.array_equal(chosen0, jnp.argmax(t, axis=-1).astype(jnp.int32))

    print("KERNEL_OK")
</pallas_src>

<mosaic_0001>
module attributes {stable_mosaic.version = 11 : i64} {
  func.func @_eps_greedy_eval_kernel(%arg0: i32, %arg1: memref<16x16xf32, #tpu.memory_space<vmem>>, %arg2: memref<16x1xf32, #tpu.memory_space<vmem>>, %arg3: memref<16x1xi32, #tpu.memory_space<vmem>>) attributes {dimension_semantics = [#tpu.dimension_semantics<parallel>], iteration_bounds = array<i64: 1>, scalar_prefetch = 0 : i64, scratch_operands = 0 : i64, tpu.core_type = #tpu.core_type<tc>, window_params = [{transform_indices = @transform_0, window_bounds = array<i64: 16, 16>}, {transform_indices = @transform_1, window_bounds = array<i64: 16, 1>}, {transform_indices = @transform_2, window_bounds = array<i64: 16, 1>}]} {
    %c0 = arith.constant 0 : index
    %c0_0 = arith.constant 0 : index
    %0 = vector.load %arg1[%c0, %c0_0] : memref<16x16xf32, #tpu.memory_space<vmem>>, vector<16x16xf32>
    %1 = tpu.iota {dimensions = array<i32: 1>} : vector<16x16xi32>
    %cst = arith.constant dense<0xFF800000> : vector<16xf32>
    %2 = vector.multi_reduction <maximumf>, %0, %cst [1] : vector<16x16xf32> to vector<16xf32>
    %3 = vector.shape_cast %2 : vector<16xf32> to vector<16x1xf32>
    %4 = vector.broadcast %3 : vector<16x1xf32> to vector<16x16xf32>
    %5 = arith.cmpf oge, %0, %4 : vector<16x16xf32>
    %c16_i32 = arith.constant 16 : i32
    %6 = vector.broadcast %c16_i32 : i32 to vector<16x16xi32>
    %7 = arith.select %5, %1, %6 : vector<16x16xi1>, vector<16x16xi32>
    %cst_1 = arith.constant dense<2147483647> : vector<16xi32>
    %8 = vector.multi_reduction <minsi>, %7, %cst_1 [1] : vector<16x16xi32> to vector<16xi32>
    %9 = vector.shape_cast %8 : vector<16xi32> to vector<16x1xi32>
    %c0_2 = arith.constant 0 : index
    %c0_3 = arith.constant 0 : index
    %10 = vector.load %arg2[%c0_2, %c0_3] : memref<16x1xf32, #tpu.memory_space<vmem>>, vector<16x1xf32>
    tpu.vector_store %arg2[%c0_2, %c0_3], %3 {strides = array<i32>} : memref<16x1xf32, #tpu.memory_space<vmem>>, vector<16x1xf32>,
    %c0_4 = arith.constant 0 : index
    %c0_5 = arith.constant 0 : index
    %11 = vector.load %arg3[%c0_4, %c0_5] : memref<16x1xi32, #tpu.memory_space<vmem>>, vector<16x1xi32>
    tpu.vector_store %arg3[%c0_4, %c0_5], %9 {strides = array<i32>} : memref<16x1xi32, #tpu.memory_space<vmem>>, vector<16x1xi32>,
    return
  }
  func.func @transform_0(%arg0: i32) -> (i32, i32) {
    %c0_i32 = arith.constant 0 : i32
    %c0_i32_0 = arith.constant 0 : i32
    return %arg0, %c0_i32 : i32, i32
  }
  func.func @transform_1(%arg0: i32) -> (i32, i32) {
    %c0_i32 = arith.constant 0 : i32
    %c0_i32_0 = arith.constant 0 : i32
    return %arg0, %c0_i32 : i32, i32
  }
  func.func @transform_2(%arg0: i32) -> (i32, i32) {
    %c0_i32 = arith.constant 0 : i32
    %c0_i32_0 = arith.constant 0 : i32
    return %arg0, %c0_i32 : i32, i32
  }
}

</mosaic_0001>

<bundles_post_ra>
// kernel: tpu_custom_call.1
= control target key start
LH: loop header
LB: loop body
LE: loop exit
PB: predicated region body
PF: predicated region fallthrough
CT: control target
= control target key end

     0   :  { %8 = vsyncpa [#allocation3], 0  ;;  %s114_s12 = smov [#allocation2]   ;;  %s115_s14 = smov 128   ;;  %s155_s0 = inlined_call_operand.hbm [shape: f32[16,16], index: 0, kind: input, shape index: {}]   ;;  %s156_s1 = inlined_call_operand.vmem [shape: f32[16,1], index: 1, kind: output, shape index: {0}]   ;;  %s157_s2 = inlined_call_operand.vmem [shape: s32[16,1], index: 2, kind: output, shape index: {1}]  }
   0x1   :  { %s13_s11 = sshll.u32 %s155_s0, 4  ;;  %s15_s13 = sshll.u32 %s114_s12, 4  ;;  %s14_s11 = int_to_ptr.hbm [resolvable:$true] %s13_s11  ;;  %s16_s13 = int_to_ptr.vmem [resolvable:$true] %s15_s13 }
   0x2   :  { %s116_s15 = smov 8  }
   0x3   :  { %21 = dma.hbm_to_vmem [thread:$0]  %s14_s11, 256, %s16_s13, [#allocation3], %s115_s14, %s115_s14, %s116_s15  }
   0x4   :  { %112 = dma.done.wait [#allocation3], 256  }
   0x5   :  { %113 = vsyncadd [#allocation3], 4294967040  ;;  %vm30_vm0 = vcmask 130048   ;;  %v26_v0 = vld [vmem:[#allocation2] sm:$0xff]  ;;  %v27_v2 = vld [vmem:[#allocation2 + $0x8] sm:$0xff]  ;;  %v28_v4 = vlaneseq  ;;  %vm71_vm1 = vcmask 7168  }
   0x6   :  { %v31_v1 = vsel %vm30_vm0, %v26_v0, -inf  ;;  %v34_v3 = vsel %vm30_vm0, %v27_v2, -inf }
   0x7   :  { %32 = vmax.xlane.f32.xlu0 %v31_v1  ;;  %v29_v5 = vand.u32 127, %v28_v4 }
   0xf   :  { %35 = vmax.xlane.f32.xlu0 %v34_v3 }
  0x7a   :  { %v33_v6 = vpop.xlane.xlu0 %32 }
  0x7b   :  { %vm37_vm2 = vcmp.ge.f32.partialorder %v26_v0, %v33_v6  ;;  %72 = vst.msk [vmem:[%s156_s1] sm:$0xff] %vm71_vm1, %v33_v6 }
  0x7c   :  { %v39_v7 = vsel %vm37_vm2, %v29_v5, 16 }
  0x7d   :  { %v41_v8 = vsel %vm30_vm0, %v39_v7, 2147483647 }
  0x7e   :  { %v43_v9 = vshra.s32 %v41_v8, 16  ;;  %v42_v16 = vand.u32 65535, %v41_v8 }
  0x80   :  { %v45_v10 = vcvt.s32.f32 %v43_v9  ;;  %v44_v18 = vcvt.s32.f32 %v42_v16 }
  0x82   :  { %46 = vmin.xlane.f32.xlu1 %v45_v10  ;;  %v36_v11 = vpop.xlane.xlu0 %35 }
  0x83   :  { %vm38_vm3 = vcmp.ge.f32.partialorder %v27_v2, %v36_v11  ;;  %73 = vst.msk [vmem:[%s156_s1 + $0x8] sm:$0xff] %vm71_vm1, %v36_v11 }
  0x84   :  { %v40_v12 = vsel %vm38_vm3, %v29_v5, 16 }
  0x85   :  { %v56_v13 = vsel %vm30_vm0, %v40_v12, 2147483647 }
  0x86   :  { %v58_v14 = vshra.s32 %v56_v13, 16  ;;  %v57_v20 = vand.u32 65535, %v56_v13 }
  0x88   :  { %v60_v15 = vcvt.s32.f32 %v58_v14  ;;  %v59_v22 = vcvt.s32.f32 %v57_v20 }
  0x8a   :  { %61 = vmin.xlane.f32.xlu1 %v60_v15 }
  0xf5   :  { %v47_v17 = vpop.xlane.xlu1 %46 }
  0xf6   :  { %vm48_vm4 = vcmp.eq.f32.partialorder %v45_v10, %v47_v17  ;;  %v53_v24 = vcvt.f32.s32 %v47_v17 }
  0xf7   :  { %v49_v19 = vsel %vm48_vm4, %v44_v18, inf }
  0xf8   :  { %50 = vmin.xlane.f32.xlu2 %v49_v19  ;;  %v54_v26 = vshll.u32 %v53_v24, 16 }
  0xfd   :  { %v62_v21 = vpop.xlane.xlu1 %61 }
  0xfe   :  { %vm63_vm5 = vcmp.eq.f32.partialorder %v60_v15, %v62_v21  ;;  %v68_v29 = vcvt.f32.s32 %v62_v21 }
  0xff   :  { %v64_v23 = vsel %vm63_vm5, %v59_v22, inf }
 0x100   :  { %65 = vmin.xlane.f32.xlu2 %v64_v23  ;;  %v69_v31 = vshll.u32 %v68_v29, 16 }
 0x16b   :  { %v51_v25 = vpop.xlane.xlu2 %50 }
 0x16c   :  { %v52_v27 = vcvt.f32.s32 %v51_v25 }
 0x16e   :  { %v55_v28 = vadd.s32 %v54_v26, %v52_v27 }
 0x170   :  { %74 = vst.msk [vmem:[%s157_s2] sm:$0xff] %vm71_vm1, %v55_v28 }
 0x173   :  { %v66_v30 = vpop.xlane.xlu2 %65 }
 0x174   :  { %v67_v32 = vcvt.f32.s32 %v66_v30 }
 0x176   :  { %v70_v33 = vadd.s32 %v69_v31, %v67_v32 }
 0x178   :  { %75 = vst.msk [vmem:[%s157_s2 + $0x8] sm:$0xff] %vm71_vm1, %v70_v33 }
 0x179   :  { %84 = vsyncpa [#allocation3], 1 }

</bundles_post_ra>
